<compile_context>
chip_gen: v6e
topology: v6e:2x2x1
jax: 0.10.0
libtpu: 0.0.40
codegen_flags: <defaults>
</compile_context>

<pallas_src>
import functools

import jax
import jax.numpy as jnp
from jax.experimental import pallas as pl
from jax.experimental.pallas import tpu as pltpu


def _round_up(x, m):
    return ((x + m - 1) // m) * m


def _gelu(t, approx):
    if approx:
        # tanh approximation: transcendental goes to the EUP slot (otherwise idle).
        return 0.5 * t * (1.0 + jnp.tanh(0.7978845608028654 * (t + 0.044715 * t * t * t)))
    # exact erf GELU — matches torch.nn.GELU() default semantics.
    return 0.5 * t * (1.0 + jax.lax.erf(t * 0.7071067811865476))


def _make_kernel(use_acc, approx_gelu):
    if use_acc:
        def kernel(x_ref, w1_ref, b1_ref, w2_ref, b2_ref, o_ref, acc_ref):
            # x_ref:(TM,Dp)  w1_ref:(Dp,TH)  b1_ref:(1,TH) f32
            # w2_ref:(TH,Dp) b2_ref:(1,Dp) f32  o_ref:(TM,Dp)  acc_ref:(TM,Dp) f32
            h = pl.program_id(1)

            @pl.when(h == 0)
            def _():
                acc_ref[...] = jnp.zeros_like(acc_ref)

            # dense_1 chunk on the MXU (f32 accumulation), bias + GELU in f32.
            t = jnp.dot(x_ref[...], w1_ref[...],
                        preferred_element_type=jnp.float32) + b1_ref[...]
            t = _gelu(t, approx_gelu)

            # dense_2 chunk, accumulate into the resident f32 accumulator.
            acc_ref[...] += jnp.dot(t.astype(w2_ref.dtype), w2_ref[...],
                                    preferred_element_type=jnp.float32)

            @pl.when(h == pl.num_programs(1) - 1)
            def _():
                # dropout(p=0.1) is identity in eval()/inference mode.
                # TODO(synk): training-mode dropout would use pltpu.prng_seed +
                # pltpu.prng_random_bits to build the keep-mask in-kernel.
                o_ref[...] = (acc_ref[...] + b2_ref[...]).astype(o_ref.dtype)

        return kernel

    def kernel(x_ref, w1_ref, b1_ref, w2_ref, b2_ref, o_ref):
        # f32 output: accumulate directly into the resident output tile
        # (saves the acc scratch and the finalize copy — matters on v7x VMEM).
        h = pl.program_id(1)

        @pl.when(h == 0)
        def _():
            # Seed the resident tile with the dense_2 bias (broadcast).
            # dropout(p=0.1) is identity in eval()/inference mode.
            o_ref[...] = jnp.zeros_like(o_ref) + b2_ref[...]

        t = jnp.dot(x_ref[...], w1_ref[...],
                    preferred_element_type=jnp.float32) + b1_ref[...]
        t = _gelu(t, approx_gelu)
        o_ref[...] += jnp.dot(t.astype(w2_ref.dtype), w2_ref[...],
                              preferred_element_type=jnp.float32)

    return kernel


def _vmem_bytes(tm, th, Dp, itemsize, out_itemsize, use_acc):
    """Estimate VMEM footprint (double-buffered tiles + resident scratch)."""
    b = 2 * tm * Dp * itemsize         # x tile
    b += 2 * Dp * th * itemsize        # W1 chunk
    b += 2 * th * Dp * itemsize        # W2 chunk
    b += 2 * 8 * th * 4                # b1 chunk (f32, sublane-padded)
    b += 2 * 8 * Dp * 4                # b2 (f32, sublane-padded)
    b += 2 * tm * Dp * out_itemsize    # output tile
    if use_acc:
        b += tm * Dp * 4               # f32 accumulator (single buffer)
    return b


# Conservative tile budget: fits v7x's 64 MiB VMEM with headroom; well inside
# v5e/v6e's 128 MiB.
_VMEM_TILE_BUDGET = 44 * 1024 * 1024


def _choose_tiles(M, Dp, Hp, itemsize, out_itemsize, use_acc):
    Ma = _round_up(M, 8)

    # Row tile: up to 512 rows, but guarantee >=2 parallel grid steps when
    # possible so both v7x TensorCores get work.
    tm_target = min(512, Ma)
    if Ma // tm_target < 2 and Ma >= 16:
        tm_target = _round_up(Ma // 2, 8)

    def fit_tm(t):
        # Prefer a tm that divides Ma (no row padding); fall back to padding
        # rather than degenerate tiny tiles.
        tt = t
        while Ma % tt:
            tt -= 8
        if tt < max(8, t // 2):
            tt = t
        return tt

    tm = fit_tm(tm_target)

    n128 = Hp // 128
    while True:
        th = 0
        # Largest hidden chunk that divides Hp and fits the VMEM budget.
        # c == n128 (th == Hp) is the weight-resident mode: constant W1/W2
        # index_maps -> weights DMA'd exactly once for the whole call.
        for c in range(n128, 0, -1):
            if n128 % c:
                continue
            cand = 128 * c
            if _vmem_bytes(tm, cand, Dp, itemsize, out_itemsize, use_acc) <= _VMEM_TILE_BUDGET:
                th = cand
                break
        if th or tm <= 8:
            break
        tm = fit_tm(max(8, (tm // 2 // 8) * 8 or 8))
    if th == 0:
        th = 128

    Mp = _round_up(Ma, tm)
    return tm, th, Mp


def feedforward(x, w1, b1, w2, b2, *, compute_dtype=jnp.bfloat16, approx_gelu=False):
    """x: (B, S, D). w1: (D, 4D), b1: (4D,), w2: (4D, D), b2: (D,).

    compute_dtype: dtype fed to the MXU (default bf16 — full MXU throughput,
    half the weight/activation DMA bytes); accumulation, bias adds and GELU
    stay in f32.  Pass pre-cast bf16 weights to avoid the per-call cast copy.
    """
    B, S, D = x.shape
    H = w1.shape[1]
    M = B * S
    out_dtype = x.dtype
    cdt = jnp.dtype(compute_dtype)
    itemsize = cdt.itemsize
    out_itemsize = jnp.dtype(out_dtype).itemsize

    # Lane-dense feature padding (multiple of 128).  NOTE: zero-padding the
    # hidden dim is only safe because b1 is zero-padded too (gelu(0) == 0 and
    # the padded W2 rows are zero), so padded hidden columns contribute nothing.
    Dp = _round_up(D, 128)
    Hp = _round_up(H, 128)

    use_acc = out_dtype != jnp.float32
    tm, th, Mp = _choose_tiles(M, Dp, Hp, itemsize, out_itemsize, use_acc)

    # --- wrapper-side prep: cast/pad ONLY when actually needed ----------------
    x2 = x.reshape(M, D)
    if x2.dtype != cdt:
        x2 = x2.astype(cdt)
    if (Mp != M) or (Dp != D):
        x2 = jnp.pad(x2, ((0, Mp - M), (0, Dp - D)))

    w1p = w1 if w1.dtype == cdt else w1.astype(cdt)
    w2p = w2 if w2.dtype == cdt else w2.astype(cdt)
    if (Dp != D) or (Hp != H):
        w1p = jnp.pad(w1p, ((0, Dp - D), (0, Hp - H)))
        w2p = jnp.pad(w2p, ((0, Hp - H), (0, Dp - D)))

    b1p = b1.astype(jnp.float32).reshape(1, H)
    b2p = b2.astype(jnp.float32).reshape(1, D)
    if Hp != H:
        b1p = jnp.pad(b1p, ((0, 0), (0, Hp - H)))
    if Dp != D:
        b2p = jnp.pad(b2p, ((0, 0), (0, Dp - D)))

    # --- cost estimate (accounts for weight re-streaming per row tile) --------
    n_row_tiles = Mp // tm
    weight_reads = 1 if th == Hp else n_row_tiles
    cost = pl.CostEstimate(
        flops=4 * M * D * H,                       # two matmuls, 2*M*D*H each
        transcendentals=M * H,                     # one erf/tanh per hidden activation
        bytes_accessed=(Mp * Dp * itemsize
                        + weight_reads * (Dp * Hp + Hp * Dp) * itemsize
                        + (Hp + Dp) * 4
                        + Mp * Dp * out_itemsize),
    )

    footprint = _vmem_bytes(tm, th, Dp, itemsize, out_itemsize, use_acc)
    vmem_limit = min(int(footprint) + (8 << 20), 96 << 20)

    scratch = [pltpu.VMEM((tm, Dp), jnp.float32)] if use_acc else []
    kernel = _make_kernel(use_acc, approx_gelu)

    out = pl.pallas_call(
        kernel,
        out_shape=jax.ShapeDtypeStruct((Mp, Dp), out_dtype),
        grid_spec=pltpu.PrefetchScalarGridSpec(
            num_scalar_prefetch=0,
            grid=(Mp // tm, Hp // th),              # (rows: parallel, hidden: reduction)
            in_specs=[
                pl.BlockSpec((tm, Dp), lambda i, h: (i, 0)),   # x tile (resident over h)
                pl.BlockSpec((Dp, th), lambda i, h: (0, h)),   # W1 chunk
                pl.BlockSpec((1, th), lambda i, h: (0, h)),    # b1 chunk (f32)
                pl.BlockSpec((th, Dp), lambda i, h: (h, 0)),   # W2 chunk
                pl.BlockSpec((1, Dp), lambda i, h: (0, 0)),    # b2 (f32, resident)
            ],
            out_specs=pl.BlockSpec((tm, Dp), lambda i, h: (i, 0)),
            scratch_shapes=scratch,
        ),
        compiler_params=pltpu.CompilerParams(
            dimension_semantics=("parallel", "arbitrary"),
            vmem_limit_bytes=vmem_limit,
        ),
        cost_estimate=cost,
    )(x2, w1p, b1p, w2p, b2p)

    if (Mp != M) or (Dp != D):
        out = out[:M, :D]
    return out.reshape(B, S, D)


if __name__ == "__main__":
    # Small shapes consistent with the module: dhidden=32, seq=8, batch=2.
    B, S, D = 2, 8, 32
    H = 4 * D

    key = jax.random.PRNGKey(0)
    kx, kw1, kb1, kw2, kb2 = jax.random.split(key, 5)

    x = jax.random.normal(kx, (B, S, D), dtype=jnp.float32)
    # PyTorch Linear stores (out, in); we store the transposed (in, out) layout
    # so the kernel does plain x @ W.
    w1 = jax.random.normal(kw1, (D, H), dtype=jnp.float32) * 0.02
    b1 = jax.random.normal(kb1, (H,), dtype=jnp.float32) * 0.02
    w2 = jax.random.normal(kw2, (H, D), dtype=jnp.float32) * 0.02
    b2 = jax.random.normal(kb2, (D,), dtype=jnp.float32) * 0.02

    # Reference in plain JAX (exact erf GELU, eval-mode dropout = identity).
    h_ref = jnp.dot(x, w1) + b1
    h_ref = 0.5 * h_ref * (1.0 + jax.lax.erf(h_ref / jnp.sqrt(2.0)))
    y_ref = jnp.dot(h_ref, w2) + b2

    # Exact f32 MXU path: matches reference to tight tolerance.
    y_f32 = feedforward(x, w1, b1, w2, b2, compute_dtype=jnp.float32)
    jax.block_until_ready(y_f32)
    assert jnp.allclose(y_f32, y_ref, atol=1e-5, rtol=1e-5), "f32 mismatch vs reference"

    # Default (production) bf16 MXU path: f32 accumulation, looser tolerance.
    y_bf16 = feedforward(x, w1, b1, w2, b2)
    jax.block_until_ready(y_bf16)
    assert jnp.allclose(y_bf16, y_ref, atol=2e-2, rtol=2e-2), "bf16 mismatch vs reference"

    print("KERNEL_OK")
</pallas_src>

<mosaic_0001>
module attributes {stable_mosaic.version = 11 : i64} {
  func.func @kernel(%arg0: i32, %arg1: i32, %arg2: memref<8x128xf32, #tpu.memory_space<vmem>>, %arg3: memref<128x128xf32, #tpu.memory_space<vmem>>, %arg4: memref<1x128xf32, #tpu.memory_space<vmem>>, %arg5: memref<128x128xf32, #tpu.memory_space<vmem>>, %arg6: memref<1x128xf32, #tpu.memory_space<vmem>>, %arg7: memref<8x128xf32, #tpu.memory_space<vmem>>) attributes {dimension_semantics = [#tpu.dimension_semantics<parallel>, #tpu.dimension_semantics<arbitrary>], iteration_bounds = array<i64: 2, 1>, scalar_prefetch = 0 : i64, scratch_operands = 0 : i64, tpu.core_type = #tpu.core_type<tc>, window_params = [{transform_indices = @transform_0, window_bounds = array<i64: 8, 128>}, {transform_indices = @transform_1, window_bounds = array<i64: 128, 128>}, {transform_indices = @transform_2, window_bounds = array<i64: 1, 128>}, {transform_indices = @transform_3, window_bounds = array<i64: 128, 128>}, {pipeline_mode = #tpu.pipeline_mode<synchronous>, transform_indices = @transform_4, window_bounds = array<i64: 1, 128>}, {transform_indices = @transform_5, window_bounds = array<i64: 8, 128>}]} {
    %c0_i32 = arith.constant 0 : i32
    %0 = arith.cmpi eq, %arg1, %c0_i32 : i32
    %1 = arith.extui %0 : i1 to i32
    %c0_i32_0 = arith.constant 0 : i32
    %2 = arith.cmpi ne, %1, %c0_i32_0 : i32
    scf.if %2 {
      %cst_16 = arith.constant 0.000000e+00 : f32
      %22 = vector.broadcast %cst_16 : f32 to vector<8x128xf32>
      %c0_17 = arith.constant 0 : index
      %c0_18 = arith.constant 0 : index
      %23 = vector.load %arg6[%c0_17, %c0_18] : memref<1x128xf32, #tpu.memory_space<vmem>>, vector<1x128xf32>
      %24 = vector.broadcast %23 : vector<1x128xf32> to vector<8x128xf32>
      %25 = arith.addf %22, %24 : vector<8x128xf32>
      %c0_19 = arith.constant 0 : index
      %c0_20 = arith.constant 0 : index
      %26 = vector.load %arg7[%c0_19, %c0_20] : memref<8x128xf32, #tpu.memory_space<vmem>>, vector<8x128xf32>
      tpu.vector_store %arg7[%c0_19, %c0_20], %25 {strides = array<i32>} : memref<8x128xf32, #tpu.memory_space<vmem>>, vector<8x128xf32>,
    } else {
    }
    %c0 = arith.constant 0 : index
    %c0_1 = arith.constant 0 : index
    %3 = vector.load %arg2[%c0, %c0_1] : memref<8x128xf32, #tpu.memory_space<vmem>>, vector<8x128xf32>
    %c0_2 = arith.constant 0 : index
    %c0_3 = arith.constant 0 : index
    %4 = vector.load %arg3[%c0_2, %c0_3] : memref<128x128xf32, #tpu.memory_space<vmem>>, vector<128x128xf32>
    %cst = arith.constant dense<0.000000e+00> : vector<8x128xf32>
    %5 = tpu.matmul %3, %4, %cst {dimension_numbers = #tpu.dot_dimension_numbers<[1], [0], [0], [1], [0, 0, 1, 1], [], []>} : vector<8x128xf32>, vector<128x128xf32>, vector<8x128xf32> -> vector<8x128xf32>
    %c0_4 = arith.constant 0 : index
    %c0_5 = arith.constant 0 : index
    %6 = vector.load %arg4[%c0_4, %c0_5] : memref<1x128xf32, #tpu.memory_space<vmem>>, vector<1x128xf32>
    %7 = vector.broadcast %6 : vector<1x128xf32> to vector<8x128xf32>
    %8 = arith.addf %5, %7 : vector<8x128xf32>
    %cst_6 = arith.constant 5.000000e-01 : f32
    %9 = vector.broadcast %cst_6 : f32 to vector<8x128xf32>
    %10 = arith.mulf %9, %8 : vector<8x128xf32>
    %cst_7 = arith.constant 0.707106769 : f32
    %11 = vector.broadcast %cst_7 : f32 to vector<8x128xf32>
    %12 = arith.mulf %8, %11 : vector<8x128xf32>
    %13 = math.erf %12 : vector<8x128xf32>
    %cst_8 = arith.constant 1.000000e+00 : f32
    %14 = vector.broadcast %cst_8 : f32 to vector<8x128xf32>
    %15 = arith.addf %14, %13 : vector<8x128xf32>
    %16 = arith.mulf %10, %15 : vector<8x128xf32>
    %c0_9 = arith.constant 0 : index
    %c0_10 = arith.constant 0 : index
    %17 = vector.load %arg7[%c0_9, %c0_10] : memref<8x128xf32, #tpu.memory_space<vmem>>, vector<8x128xf32>
    %c0_11 = arith.constant 0 : index
    %c0_12 = arith.constant 0 : index
    %18 = vector.load %arg5[%c0_11, %c0_12] : memref<128x128xf32, #tpu.memory_space<vmem>>, vector<128x128xf32>
    %cst_13 = arith.constant dense<0.000000e+00> : vector<8x128xf32>
    %19 = tpu.matmul %16, %18, %cst_13 {dimension_numbers = #tpu.dot_dimension_numbers<[1], [0], [0], [1], [0, 0, 1, 1], [], []>} : vector<8x128xf32>, vector<128x128xf32>, vector<8x128xf32> -> vector<8x128xf32>
    %20 = arith.addf %17, %19 : vector<8x128xf32>
    %c0_14 = arith.constant 0 : index
    %c0_15 = arith.constant 0 : index
    %21 = vector.load %arg7[%c0_14, %c0_15] : memref<8x128xf32, #tpu.memory_space<vmem>>, vector<8x128xf32>
    tpu.vector_store %arg7[%c0_14, %c0_15], %20 {strides = array<i32>} : memref<8x128xf32, #tpu.memory_space<vmem>>, vector<8x128xf32>,
    return
  }
  func.func @transform_0(%arg0: i32, %arg1: i32) -> (i32, i32) {
    %c0_i32 = arith.constant 0 : i32
    %c0_i32_0 = arith.constant 0 : i32
    return %arg0, %c0_i32 : i32, i32
  }
  func.func @transform_1(%arg0: i32, %arg1: i32) -> (i32, i32) {
    %c0_i32 = arith.constant 0 : i32
    %c0_i32_0 = arith.constant 0 : i32
    return %c0_i32, %arg1 : i32, i32
  }
  func.func @transform_2(%arg0: i32, %arg1: i32) -> (i32, i32) {
    %c0_i32 = arith.constant 0 : i32
    %c0_i32_0 = arith.constant 0 : i32
    return %c0_i32, %arg1 : i32, i32
  }
  func.func @transform_3(%arg0: i32, %arg1: i32) -> (i32, i32) {
    %c0_i32 = arith.constant 0 : i32
    %c0_i32_0 = arith.constant 0 : i32
    return %arg1, %c0_i32 : i32, i32
  }
  func.func @transform_4(%arg0: i32, %arg1: i32) -> (i32, i32) {
    %c0_i32 = arith.constant 0 : i32
    %c0_i32_0 = arith.constant 0 : i32
    %c0_i32_1 = arith.constant 0 : i32
    return %c0_i32, %c0_i32_0 : i32, i32
  }
  func.func @transform_5(%arg0: i32, %arg1: i32) -> (i32, i32) {
    %c0_i32 = arith.constant 0 : i32
    %c0_i32_0 = arith.constant 0 : i32
    return %arg0, %c0_i32 : i32, i32
  }
}

</mosaic_0001>

<bundles_post_ra>
// kernel: tpu_custom_call.1
= control target key start
LH: loop header
LB: loop body
LE: loop exit
PB: predicated region body
PF: predicated region fallthrough
CT: control target
= control target key end

     0   :  { %s1283_s0 = inlined_call_operand.hbm [shape: f32[16,128], index: 0, kind: input, shape index: {}]   ;;  %s1284_s1 = inlined_call_operand.hbm [shape: f32[128,128], index: 1, kind: input, shape index: {}]   ;;  %s1285_s2 = inlined_call_operand.vmem [shape: f32[1,128], index: 2, kind: input, shape index: {}]   ;;  %s1286_s3 = inlined_call_operand.hbm [shape: f32[128,128], index: 3, kind: input, shape index: {}]   ;;  %s1287_s4 = inlined_call_operand.vmem [shape: f32[1,128], index: 4, kind: input, shape index: {}]   ;;  %s1288_s5 = inlined_call_operand.hbm [shape: f32[16,128], index: 5, kind: output, shape index: {}]  }
   0x1   :  { %1292 = sst [smem:[#allocation12_spill]] %s1284_s1 }
   0x2   :  { %10 = vsyncpa [#allocation3], 0 }
   0x3   :  { %12 = vsyncpa [#allocation3 + $0x1], 0 }
   0x4   :  { %13 = vsyncpa [#allocation6], 0 }
   0x5   :  { %14 = vsyncpa [#allocation4], 0 }
   0x6   :  { %16 = vsyncpa [#allocation4 + $0x1], 0  ;;  %s1056_s18 = smov 0   ;;  %s1058_s19 = smov 0  }
   0x7   :  { %s1060_s20 = smov 0   ;;  %s1062_s21 = smov 0  }
   0x8   :  { %s1064_s22 = smov 0   ;;  %s1066_s23 = smov 0  }
   0x9 LB: > { %s639_s24 = sadd.s32 4294967295, %s1016_s23   ;;  %s640_s25 = sadd.s32 4294967294, %s1016_s23   ;;  %s1016_s23 = sphi %s1066_s23, %s22_s23   ;;  %s1012_s22 = sphi %s1064_s22, %s1310_s22   ;;  %s1008_s21 = sphi %s1062_s21, %s1309_s21   ;;  %s1004_s20 = sphi %s1060_s20, %s1308_s20   ;;  %s1000_s19 = sphi %s1058_s19, %s1307_s19   ;;  %s996_s18 = sphi %s1056_s18, %s1306_s18  }
   0xa   : > { %p54_p0 = scmp.ne.s32.totalorder %s1000_s19, %s996_s18  ;;  %p1090_p1 = scmp.eq.s32.totalorder %s639_s24, 0 }
   0xb   : > { %p1094_p2 = scmp.eq.s32.totalorder %s639_s24, 1  ;;  %p183_p3 = scmp.eq.s32.totalorder %s640_s25, 1 }
   0xc   : > { %s1293_s26 = scalar_select %p1090_p1, 1, 0 }
   0xd   : > { %p1100_p4 = por %p1090_p1, %p54_p0  ;;  %p641_p5 = scmp.ge.s32.totalorder %s1016_s23, 1 }
   0xe   : > { %p1105_p6 = por %p183_p3, %p54_p0  ;;  %p190_p7 = scmp.lt.s32.totalorder %s1016_s23, 3 }
   0xf   : > { %s1295_s28 = scalar_select %p1100_p4, 1, 0 }
  0x10   : > { %s1296_s29 = scalar_select %p1105_p6, 1, 0 }
  0x11   : > { %p1110_p8 = pnand %p641_p5, %p190_p7  ;;  %s1018_s6 = smov [#allocation5]  }
  0x12   : > { %s204_s7 = sshll.u32 %s1018_s6, 4  ;;  %s1019_s9 = smov [#allocation7]   ;;  %s205_s7 = int_to_ptr.vmem [resolvable:$true] %s204_s7 }
  0x13   : > { %p775_p9 = pneg %p1110_p8  ;;  %s226_s10 = sshll.u32 %s1019_s9, 4  ;;  %s227_s10 = int_to_ptr.vmem [resolvable:$true] %s226_s10 }
  0x14   : > { %s863_s11 = scalar_lea.vmem %s205_s7, 2048  ;;  %p871_p5 = scmp.lt.s32.totalorder %s205_s7, %s205_s7 }
  0x15   : > { %p1119_p11 = pnand %p775_p9, %p1090_p1  ;;  %p864_p13 = scmp.ne.s32.totalorder %s205_s7, %s863_s11 }
  0x16   : > { %p872_p7 = scmp.lt.s32.totalorder %s863_s11, %s863_s11 }
  0x17   : > { %p854_p12 = pneg %p1119_p11 }
  0x18   : > { %p873_p10 = por %p872_p7, %p871_p5 }
  0x19   : > { %p866_p0 = pnand %p864_p13, %p854_p12 }
  0x1b   : > { %p867_p3 = pneg %p866_p0 }
  0x1d   : > { %p874_p9 = pnand %p873_p10, %p867_p3 }
  0x1f   : > { %877 = shalt.err (!%p874_p9)
}
  0x20   : > { %s1020_s12 = smov 128   ;;  %s1021_s13 = smov 8  }
  0x21   : > { %s1299_s1 = sld [smem:[#allocation12_spill]]  ;;  %s889_s16 = scalar_lea.vmem %s227_s10, 2048 }
  0x22   : > { %p890_p6 = scmp.ne.s32.totalorder %s227_s10, %s889_s16  ;;  %p897_p1 = scmp.lt.s32.totalorder %s227_s10, %s227_s10 }
  0x23   : > { %p898_p4 = scmp.lt.s32.totalorder %s889_s16, %s889_s16 }
  0x24   : > { %p892_p13 = pnand %p890_p6, %p854_p12 }
  0x25   : > { %p899_p5 = por %p898_p4, %p897_p1 }
  0x26   : > { %p893_p0 = pneg %p892_p13 }
  0x27   : > { %778 = dma.hbm_to_vmem [thread:$0]  (!%p1119_p11), %s1299_s1, 2048, %s205_s7, [#allocation6], %s1020_s12, %s1020_s12, %s1021_s13  }
  0x28   : > { %p900_p10 = pnand %p899_p5, %p893_p0 }
  0x2a   : > { %903 = shalt.err (!%p900_p10)
}
  0x2b   : > { %781 = dma.hbm_to_vmem [thread:$0]  (!%p1119_p11), %s1286_s3, 2048, %s227_s10, [#allocation6], %s1020_s12, %s1020_s12, %s1021_s13  }
  0x2c   : > { %s34_s25 = sadd.s32 1, %s1012_s22  ;;  %s41_s6 = sadd.s32 1, %s1004_s20 }
  0x2d   : > { %p36_p1 = scmp.ge.s32.totalorder %s34_s25, 2  ;;  %p48_p4 = scmp.ne.s32.totalorder %s1004_s20, %s1000_s19 }
  0x2e   : > { %p49_p6 = scmp.eq.s32.totalorder %s1016_s23, 0  ;;  %p792_p12 = scmp.lt.s32.totalorder %s1016_s23, 2 }
  0x2f   : > { %s1312_s25 = smov (%p36_p1, %s34_s25), 0  ;;  %p1151_p7 = por %p1094_p2, %p48_p4 }
  0x30   : > { %p50_p3 = por %p49_p6, %p48_p4  ;;  %s38_s8 = ssub.s32 %s1012_s22, %s1312_s25 }
  0x31   : > { %s243_s9 = sand.u32 1, %s1004_s20   ;;  %p39_p9 = scmp.eq.s32.totalorder %s38_s8, 0 }
  0x32   : > { %s646_s10 = sshll.u32 %s243_s9, 3  ;;  %s647_s11 = sshll.u32 %s1012_s22, 7 }
  0x33   : > { %s1160_s12 = scalar_select %p39_p9, %s1004_s20, %s41_s6  }
  0x34   : > { %s252_s15 = scalar_lea.hbm %s1283_s0, %s647_s11  ;;  %s247_s16 = scalar_lea.vmem [#allocation2], %s646_s10 }
  0x35   : > { %s254_s17 = sshll.u32 %s247_s16, 4  ;;  %p1167_p11 = pnand %p792_p12, %p50_p3  ;;  %s255_s17 = int_to_ptr.vmem [resolvable:$true] %s254_s17 }
  0x36   : > { %s244_s24 = scalar_lea.sflag [#allocation3], %s243_s9  ;;  %s917_s8 = scalar_lea.vmem %s255_s17, 128 }
  0x37   : > { %p906_p2 = pneg %p1167_p11  ;;  %p918_p13 = scmp.ne.s32.totalorder %s255_s17, %s917_s8 }
  0x38   : > { %s1022_s6 = smov [#allocation2]  }
  0x39   : > { %p920_p0 = pnand %p918_p13, %p906_p2  ;;  %s922_s1 = sshll.u32 %s1022_s6, 4  ;;  %s923_s1 = int_to_ptr.vmem [resolvable:$false] %s922_s1 }
  0x3a   : > { %s924_s11 = scalar_lea.vmem %s923_s1, 256  ;;  %p925_p10 = scmp.lt.s32.totalorder %s255_s17, %s923_s1 }
  0x3b   : > { %p921_p5 = pneg %p920_p0  ;;  %p926_p1 = scmp.lt.s32.totalorder %s924_s11, %s917_s8 }
  0x3d   : > { %p927_p4 = por %p926_p1, %p925_p10 }
  0x3f   : > { %p928_p6 = pnand %p927_p4, %p921_p5 }
  0x41   : > { %931 = shalt.err (!%p928_p6)
}
  0x42   : > { %785 = dma.hbm_to_vmem [thread:$0]  (!%p1167_p11), %s252_s15, 128, %s255_s17, %s244_s24  }
  0x43   : > { %263 = sbr.rel (%p1110_p8) target bundleno = 533 (0x215), region = 40  ;;  %s1178_s9 = sand.u32 (!%p1110_p8), 1, %s1000_s19  }
  0x44   : > { %s649_s10 = sshll.u32 (!%p1110_p8), %s1178_s9, 3  ;;  %s266_s13 = scalar_lea.sflag (!%p1110_p8), [#allocation3], %s1178_s9 }
  0x45   : > { %s1184_s1 = scalar_lea.vmem (!%p1110_p8), [#allocation2], %s649_s10  ;;  %p1302_p12 = scmp.ne.s32.totalorder (!%p1110_p8), %s1295_s28, 0 }
  0x48   : > { %983 = dma.done.wait (%p1302_p12), %s266_s13, 128  }
  0x49   : > { %985 = vsyncadd (%p1302_p12), %s266_s13, 4294967168  ;;  %p1303_p3 = scmp.ne.s32.totalorder %s1293_s26, 0 }
  0x4b   : > { %987 = dma.done.wait (%p1303_p3), [#allocation6], 4096  }
  0x4c   : > { %989 = vsyncadd (%p1303_p3), [#allocation6], 4294963200  ;;  %v1023_v0 = vmov 0.0   ;;  %vm1024_vm0 = vmmov 0   ;;  %v340_v1 = vld [vmem:[#allocation5 + $0x78] sm:$0xff]  ;;  %v339_v2 = vld [vmem:[#allocation5 + $0x70] sm:$0xff] }
  0x4d   : > { %693 = vmatprep.subr.mxu0 %v1023_v0  ;;  %725 = vmatprep.mubr.msk.f32.mxu0 %vm1024_vm0, %v1023_v0  ;;  %v338_v3 = vld [vmem:[#allocation5 + $0x68] sm:$0xff]  ;;  %v337_v4 = vld [vmem:[#allocation5 + $0x60] sm:$0xff]  ;;  %v439_v5 = vld [vmem:[#allocation7 + $0x78] sm:$0xff]  ;;  %s656_s15 = sshll.u32 %s1008_s21, 7  ;;  %s306_s16 = scalar_lea.vmem [#allocation8], %s649_s10 }
  0x4e   : > { %728 = vmatprep.subr.mxu1 %v1023_v0  ;;  %760 = vmatprep.mubr.msk.f32.mxu1 %vm1024_vm0, %v1023_v0  ;;  %v336_v6 = vld [vmem:[#allocation5 + $0x58] sm:$0xff]  ;;  %v438_v7 = vld [vmem:[#allocation7 + $0x70] sm:$0xff]  ;;  %v437_v8 = vld [vmem:[#allocation7 + $0x68] sm:$0xff]  ;;  %s526_s17 = sshll.u32 %s306_s16, 4  ;;  %s1241_s8 = scalar_lea.hbm %s1288_s5, %s656_s15  ;;  %s527_s17 = int_to_ptr.vmem [resolvable:$true] %s526_s17 }
  0x4f   : > { %694 = vmatpush3.msra.mxu0 %v340_v1  ;;  %729 = vmatpush3.msra.mxu1 %v439_v5  ;;  %v335_v9 = vld [vmem:[#allocation5 + $0x50] sm:$0xff]  ;;  %v436_v10 = vld [vmem:[#allocation7 + $0x60] sm:$0xff]  ;;  %v334_v11 = vld [vmem:[#allocation5 + $0x48] sm:$0xff]  ;;  %s513_s6 = scalar_lea.sflag [#allocation4], %s1178_s9  ;;  %s932_s11 = scalar_lea.vmem %s527_s17, 128 }
  0x50   : > { %695 = vmatprep.subr.mxu0 %v1023_v0  ;;  %730 = vmatprep.subr.mxu1 %v1023_v0  ;;  %v333_v12 = vld [vmem:[#allocation5 + $0x40] sm:$0xff]  ;;  %v332_v13 = vld [vmem:[#allocation5 + $0x38] sm:$0xff]  ;;  %v331_v14 = vld [vmem:[#allocation5 + $0x30] sm:$0xff]  ;;  %p933_p8 = scmp.ne.s32.totalorder %s527_s17, %s932_s11  ;;  %s1025_s21 = smov [#allocation8]  }
  0x51   : > { %696 = vmatpush3.msra.mxu0 %v339_v2  ;;  %731 = vmatpush3.msra.mxu1 %v438_v7  ;;  %v330_v15 = vld [vmem:[#allocation5 + $0x28] sm:$0xff]  ;;  %v329_v16 = vld [vmem:[#allocation5 + $0x20] sm:$0xff]  ;;  %v328_v17 = vld [vmem:[#allocation5 + $0x18] sm:$0xff]  ;;  %s936_s13 = sshll.u32 %s1025_s21, 4  ;;  %s937_s13 = int_to_ptr.vmem [resolvable:$false] %s936_s13 }
  0x52   : > { %697 = vmatprep.subr.mxu0 %v1023_v0  ;;  %732 = vmatprep.subr.mxu1 %v1023_v0  ;;  %v327_v18 = vld [vmem:[#allocation5 + $0x10] sm:$0xff]  ;;  %v326_v19 = vld [vmem:[#allocation5 + $0x8] sm:$0xff]  ;;  %v325_v20 = vld [vmem:[#allocation5] sm:$0xff]  ;;  %p934_p9 = pnand %p933_p8, %p1151_p7  ;;  %s938_s10 = scalar_lea.vmem %s937_s13, 256 }
  0x53   : > { %698 = vmatpush3.msra.mxu0 %v338_v3  ;;  %733 = vmatpush3.msra.mxu1 %v437_v8  ;;  %v324_v21 = vld [vmem:[%s1184_s1] sm:$0xff]  ;;  %v433_v24 = vld [vmem:[#allocation7 + $0x48] sm:$0xff]  ;;  %v432_v25 = vld [vmem:[#allocation7 + $0x40] sm:$0xff]  ;;  %p939_p2 = scmp.lt.s32.totalorder %s527_s17, %s937_s13  ;;  %p940_p13 = scmp.lt.s32.totalorder %s938_s10, %s932_s11 }
  0x54   : > { %699 = vmatprep.subr.mxu0 %v1023_v0  ;;  %734 = vmatprep.subr.mxu1 %v1023_v0  ;;  %v435_v22 = vld [vmem:[#allocation7 + $0x58] sm:$0xff]  ;;  %v434_v23 = vld [vmem:[#allocation7 + $0x50] sm:$0xff]  ;;  %v429_v28 = vld [vmem:[#allocation7 + $0x28] sm:$0xff]  ;;  %p935_p11 = pneg %p934_p9 }
  0x55   : > { %700 = vmatpush3.msra.mxu0 %v337_v4  ;;  %735 = vmatpush3.msra.mxu1 %v436_v10  ;;  %v431_v26 = vld [vmem:[#allocation7 + $0x38] sm:$0xff]  ;;  %v430_v27 = vld [vmem:[#allocation7 + $0x30] sm:$0xff]  ;;  %v428_v29 = vld [vmem:[#allocation7 + $0x20] sm:$0xff]  ;;  %p941_p0 = por %p940_p13, %p939_p2 }
  0x56   : > { %701 = vmatprep.subr.mxu0 %v1023_v0  ;;  %736 = vmatprep.subr.mxu1 %v1023_v0  ;;  %v427_v30 = vld [vmem:[#allocation7 + $0x18] sm:$0xff]  ;;  %v426_v31 = vld [vmem:[#allocation7 + $0x10] sm:$0xff]  ;;  %v425_v32 = vld [vmem:[#allocation7 + $0x8] sm:$0xff] }
  0x57   : > { %702 = vmatpush3.msra.mxu0 %v336_v6  ;;  %737 = vmatpush3.msra.mxu1 %v435_v22  ;;  %v424_v33 = vld [vmem:[#allocation7] sm:$0xff]  ;;  %v654_v34 = vld [vmem:[%s1285_s2] ss:$0 sm:$0xff]  ;;  %p942_p5 = pnand %p941_p0, %p935_p11 }
  0x58   : > { %703 = vmatprep.subr.mxu0 %v1023_v0  ;;  %738 = vmatprep.subr.mxu1 %v1023_v0  ;;  %v653_v43 = vld [vmem:[%s1287_s4] ss:$0 sm:$0xff] }
  0x59   : > { %704 = vmatpush3.msra.mxu0 %v335_v9  ;;  %739 = vmatpush3.msra.mxu1 %v434_v23 }
  0x5a   : > { %705 = vmatprep.subr.mxu0 %v1023_v0  ;;  %740 = vmatprep.subr.mxu1 %v1023_v0 }
  0x5b   : > { %706 = vmatpush3.msra.mxu0 %v334_v11  ;;  %741 = vmatpush3.msra.mxu1 %v433_v24 }
  0x5c   : > { %707 = vmatprep.subr.mxu0 %v1023_v0  ;;  %742 = vmatprep.subr.mxu1 %v1023_v0 }
  0x5d   : > { %708 = vmatpush3.msra.mxu0 %v333_v12  ;;  %743 = vmatpush3.msra.mxu1 %v432_v25 }
  0x5e   : > { %709 = vmatprep.subr.mxu0 %v1023_v0  ;;  %744 = vmatprep.subr.mxu1 %v1023_v0 }
  0x5f   : > { %710 = vmatpush3.msra.mxu0 %v332_v13  ;;  %745 = vmatpush3.msra.mxu1 %v431_v26 }
  0x60   : > { %711 = vmatprep.subr.mxu0 %v1023_v0  ;;  %746 = vmatprep.subr.mxu1 %v1023_v0 }
  0x61   : > { %712 = vmatpush3.msra.mxu0 %v331_v14  ;;  %747 = vmatpush3.msra.mxu1 %v430_v27 }
  0x62   : > { %713 = vmatprep.subr.mxu0 %v1023_v0  ;;  %748 = vmatprep.subr.mxu1 %v1023_v0 }
  0x63   : > { %714 = vmatpush3.msra.mxu0 %v330_v15  ;;  %749 = vmatpush3.msra.mxu1 %v429_v28 }
  0x64   : > { %715 = vmatprep.subr.mxu0 %v1023_v0  ;;  %750 = vmatprep.subr.mxu1 %v1023_v0 }
  0x65   : > { %716 = vmatpush3.msra.mxu0 %v329_v16  ;;  %751 = vmatpush3.msra.mxu1 %v428_v29 }
  0x66   : > { %717 = vmatprep.subr.mxu0 %v1023_v0  ;;  %752 = vmatprep.subr.mxu1 %v1023_v0 }
  0x67   : > { %718 = vmatpush3.msra.mxu0 %v328_v17  ;;  %753 = vmatpush3.msra.mxu1 %v427_v30 }
  0x68   : > { %719 = vmatprep.subr.mxu0 %v1023_v0  ;;  %754 = vmatprep.subr.mxu1 %v1023_v0 }
  0x69   : > { %720 = vmatpush3.msra.mxu0 %v327_v18  ;;  %755 = vmatpush3.msra.mxu1 %v426_v31 }
  0x6a   : > { %721 = vmatprep.subr.mxu0 %v1023_v0  ;;  %756 = vmatprep.subr.mxu1 %v1023_v0 }
  0x6b   : > { %722 = vmatpush3.msra.mxu0 %v326_v19  ;;  %757 = vmatpush3.msra.mxu1 %v425_v32 }
  0x6c   : > { %723 = vmatprep.subr.mxu0 %v1023_v0  ;;  %758 = vmatprep.subr.mxu1 %v1023_v0 }
  0x6d   : > { %724 = vmatpush3.msra.mxu0 %v325_v20  ;;  %759 = vmatpush3.msra.mxu1 %v424_v33 }
  0x6e   : > { %726 = vmatmul.mubr.f32.vlgmr.msra.gmra.mxu0 %v324_v21 }
 0x12e   : > { %v414_v35 = vpop.f32.mrf.mxu0 }
 0x12f   : > { %v415_v36 = vadd.f32 %v654_v34, %v414_v35 }
 0x130   : > { %v727_v37 = vpop.f32.mrf.mxu0 }
 0x131   : > { %v419_v38 = vmul.f32 0.70710677, %v415_v36  ;;  %v418_v40 = vmul.f32 0.5, %v415_v36 }
 0x133   : > { %850 = verf.f32 %v419_v38 }
 0x140   : > { %v851_v39 = vpop.eup %850 }
 0x141   : > { %v421_v41 = vadd.f32 1.0, %v851_v39 }
 0x143   : > { %v422_v42 = vmul.f32 %v421_v41, %v418_v40 }
 0x145   : > { %761 = vmatmul.mubr.f32.vlgmr.msra.gmra.mxu1 %v422_v42 }
 0x205   : > { %v506_v44 = vpop.f32.mrf.mxu1 }
 0x206   : > { %v510_v45 = vadd.f32 %v653_v43, %v506_v44 }
 0x207   : > { %v762_v46 = vpop.f32.mrf.mxu1 }
 0x208   : > { %511 = vst [vmem:[%s306_s16] sm:$0xff] %v510_v45 }
 0x209   : > { %945 = shalt.err (!%p942_p5)
}
 0x20a   : > { %s946_s1 = scalar_lea.hbm %s1241_s8, 128  ;;  %s950_s28 = scalar_lea.hbm %s1288_s5, 256 }
 0x20b   : > { %p947_p10 = scmp.ne.s32.totalorder %s1241_s8, %s946_s1  ;;  %p951_p6 = scmp.lt.s32.totalorder %s1241_s8, %s1288_s5 }
 0x20c   : > { %p952_p12 = scmp.lt.s32.totalorder %s950_s28, %s946_s1 }
 0x20d   : > { %p948_p1 = pnand %p947_p10, %p1151_p7 }
 0x20e   : > { %p953_p3 = por %p952_p12, %p951_p6 }
 0x20f   : > { %p949_p4 = pneg %p948_p1 }
 0x211   : > { %p954_p8 = pnand %p953_p3, %p949_p4 }
 0x213   : > { %957 = shalt.err (!%p954_p8)
}
 0x214   : > { %773 = dma.vmem_to_hbm [thread:$0]  (%p1151_p7), %s527_s17, 128, %s1241_s8, %s513_s6  }
 0x215 PF: > { %s538_s15 = sand.u32 1, %s996_s18   ;;  %p1304_p9 = scmp.ne.s32.totalorder %s1296_s29, 0 }
 0x216   : > { %p1305_p11 = scmp.ge.s32.totalorder %s1016_s23, 2  ;;  %s539_s16 = scalar_lea.sflag [#allocation4], %s538_s15 }
 0x218   : > { %p787_p2 = pnand %p1305_p11, %p1304_p9 }
 0x21a   : > { %p788_p13 = pneg %p787_p2 }
 0x21c   : > { %991 = dma.done.wait (%p788_p13), %s539_s16, 128  }
 0x21d   : > { %993 = vsyncadd (%p788_p13), %s539_s16, 4294967168  ;;  %s22_s23 = sadd.s32 1, %s1016_s23   ;;  %s1306_s18 = smov %s1000_s19 }
 0x21e   : > { %p19_p0 = scmp.ge.s32.totalorder %s22_s23, 4   ;;  %s1307_s19 = smov %s1004_s20 }
 0x21f   : > { %s1308_s20 = smov %s1160_s12  ;;  %s1309_s21 = smov %s1012_s22 }
 0x220   : > { %s1310_s22 = smov %s1312_s25  ;;  %21 = sbr.rel (!%p19_p0) target bundleno = 9 (0x9), region = 102 }
 0x225   :  { %544 = vsyncpa [#allocation3], 1 }
 0x226   :  { %546 = vsyncpa [#allocation3 + $0x1], 1 }
 0x227   :  { %547 = vsyncpa [#allocation6], 1 }
 0x228   :  { %548 = vsyncpa [#allocation4], 1 }
 0x229   :  { %550 = vsyncpa [#allocation4 + $0x1], 1 }

</bundles_post_ra>
